<compile_context>
chip_gen: v5e
topology: v5e:2x2
jax: 0.10.0
libtpu: 0.0.40
codegen_flags: <defaults>
</compile_context>

<pallas_src>
import functools
import math

import jax
import jax.numpy as jnp
from jax.experimental import pallas as pl
from jax.experimental.pallas import tpu as pltpu


def _erm_attn_kernel(txt_ref, nb_ref, wq_ref, bq_ref, wkv_ref, bkv_ref,
                     rid_ref, cid_ref, o_ref, *, dp):
    """One grid step == `tb` batch elements, processed as one dense tile.

    txt_ref : (R, dp)    bf16 query source rows,      R = tb*N
    nb_ref  : (C, dp)    bf16 key/value source rows,  C = tb*M
    wq_ref  : (dp, dp)   bf16 (in, out), 1/sqrt(D) pre-folded
    bq_ref  : (1, dp)    f32, 1/sqrt(D) pre-folded
    wkv_ref : (dp, 2dp)  bf16 fused [Wk | Wv]
    bkv_ref : (1, 2dp)   f32 fused [bk | bv]
    rid_ref : (R, 1)     int32 per-row batch id within the tile
    cid_ref : (1, C)     int32 per-col batch id within the tile
    o_ref   : (R, dp)    output (lane-dense: dp % 128 == 0)
    """
    txt = txt_ref[...]
    nb = nb_ref[...]

    # Fused projections: one wide MXU pass for Q, one for [K|V]; bf16 operands,
    # f32 accumulation.
    q = jnp.dot(txt, wq_ref[...], preferred_element_type=jnp.float32) + bq_ref[...]
    kv = jnp.dot(nb, wkv_ref[...], preferred_element_type=jnp.float32) + bkv_ref[...]

    q_bf = q.astype(jnp.bfloat16)
    kv_bf = kv.astype(jnp.bfloat16)          # single bf16 copy; slice K/V from it
    k_bf = kv_bf[:, :dp]                     # lane-aligned static slices
    v_bf = kv_bf[:, dp:]

    # q @ k^T without materialising a transpose: contract the last dims.
    s = jax.lax.dot_general(q_bf, k_bf, (((1,), (1,)), ((), ())),
                            preferred_element_type=jnp.float32)      # (R, C)

    # Block-diagonal mask: rows/cols of different batch elements never mix.
    # Applied before the row max; every row keeps >=1 valid column -> no NaN.
    same = rid_ref[...] == cid_ref[...]                               # (R,1)==(1,C)
    s = jnp.where(same, s, -1e30)

    # Stable softmax in f32; approx reciprocal uses the otherwise-idle EUP.
    s = s - jnp.max(s, axis=-1, keepdims=True)
    p = jnp.exp(s)
    p = p * pl.reciprocal(jnp.sum(p, axis=-1, keepdims=True), approx=True)

    ctx = jnp.dot(p.astype(jnp.bfloat16), v_bf,
                  preferred_element_type=jnp.float32)                 # (R, dp)
    o_ref[...] = jnp.tanh(ctx).astype(o_ref.dtype)                    # one dense store


def _vmem_cap_bytes():
    """Per-generation usable VMEM cap (leave headroom for Mosaic scratch)."""
    try:
        phys = int(pltpu.get_tpu_info().vmem_capacity_bytes)
    except Exception:
        phys = 64 << 20                      # conservative: assume v7x-sized VMEM
    # v7x: ~51 MiB of 64 MiB; v5e/v6e: 100 MiB of 128 MiB.
    return int(min(100 << 20, int(phys * 0.8)))


def _step_bytes(t, N, M, Dp):
    """Rough per-grid-step VMEM footprint (double-buffered I/O + live temps)."""
    qr, kr = t * N, t * M
    io = 2 * (qr * Dp * 2 + kr * Dp * 2 + qr * Dp * 4)   # txt/nb bf16, out f32
    tmp = (qr * Dp * (4 + 2)            # q f32 + bf16
           + kr * 2 * Dp * (4 + 2)      # kv f32 + bf16
           + qr * kr * 10               # scores/probs f32 + bf16
           + qr * Dp * 4)               # ctx f32
    return io + tmp


def _weight_bytes(Dp):
    # Wq + [Wk|Wv] bf16, biases f32.  Constant index_map means they are fetched
    # once, but a possible second pipeline buffer is still budgeted here.
    return 2 * (Dp * Dp * 2 + Dp * 2 * Dp * 2 + 3 * Dp * 4)


def _pick_block_b(B, N, M, Dp, budget_bytes):
    """Largest batch tile that divides B, keeps bf16 row blocks 16-sublane
    aligned (or is the full batch), fits the per-step VMEM budget, and prefers
    (a) >=256-row tiles (fills the MXU M dimension), (b) an even grid-step
    count (so a v7x megacore splits the 'parallel' batch axis evenly)."""
    divs = [t for t in range(1, B + 1) if B % t == 0]
    ok = [t for t in divs if t == B or ((t * N) % 16 == 0 and (t * M) % 16 == 0)]
    fit = [t for t in ok if _step_bytes(t, N, M, Dp) <= budget_bytes] or [min(ok)]

    def score(t):
        steps = B // t
        fills_mxu = int(t * N >= 256 and t * M >= 256)
        even_steps = int(steps % 2 == 0)
        return (fills_mxu, even_steps, t)

    return max(fit, key=score)


def event_reasoning_forward(text_embeddings, nb_text_embeddings, params, *, block_b=None):
    """text_embeddings: (B, N, D), nb_text_embeddings: (B, M, D) -> (B, N, D)."""
    B, N, D = text_embeddings.shape
    _, M, _ = nb_text_embeddings.shape
    Dp = ((D + 127) // 128) * 128                         # lane-dense feature dim

    def pad_feat(x):
        if Dp == D:
            return x
        return jnp.pad(x, ((0, 0), (0, 0), (0, Dp - D)))

    # Flatten batch rows in the wrapper (free at HBM level) so the kernel sees
    # plain 2-D lane-dense tiles.
    txt = pad_feat(text_embeddings).astype(jnp.bfloat16).reshape(B * N, Dp)
    nb = pad_feat(nb_text_embeddings).astype(jnp.bfloat16).reshape(B * M, Dp)

    # PyTorch Linear keeps (out, in); scale (f32), pad both dims, transpose,
    # cast bf16.  Zero rows/cols contribute nothing; tanh(0)=0 is sliced off.
    def pad_w(w, scale=1.0):
        w = w * scale
        if Dp != D:
            w = jnp.pad(w, ((0, Dp - D), (0, Dp - D)))
        return w.T.astype(jnp.bfloat16)                   # (Dp_in, Dp_out)

    def pad_b(b, scale=1.0):
        b = b * scale
        if Dp != D:
            b = jnp.pad(b, (0, Dp - D))
        return b.astype(jnp.float32)

    scale = 1.0 / math.sqrt(D)                            # folded into Wq / bq
    wq = pad_w(params["query_map_w"], scale)
    bq = pad_b(params["query_map_b"], scale).reshape(1, Dp)
    wkv = jnp.concatenate([pad_w(params["key_map_w"]),
                           pad_w(params["value_map_w"])], axis=1)     # (Dp, 2Dp)
    bkv = jnp.concatenate([pad_b(params["key_map_b"]),
                           pad_b(params["value_map_b"])]).reshape(1, 2 * Dp)

    vmem_cap = _vmem_cap_bytes()
    budget = max(4 << 20, (vmem_cap - _weight_bytes(Dp)) // 2)
    tb = block_b if block_b is not None else _pick_block_b(B, N, M, Dp, budget)
    assert B % tb == 0
    grid = (B // tb,)

    # Per-tile batch ids for the block-diagonal mask; identical every grid step.
    row_ids = jnp.repeat(jnp.arange(tb, dtype=jnp.int32), N).reshape(tb * N, 1)
    col_ids = jnp.repeat(jnp.arange(tb, dtype=jnp.int32), M).reshape(1, tb * M)

    const = lambda i: (0, 0)   # weights/biases/ids: same block every step
    kernel = functools.partial(_erm_attn_kernel, dp=Dp)

    vmem_limit = int(min(vmem_cap,
                         max(32 << 20,
                             2 * (_step_bytes(tb, N, M, Dp) + _weight_bytes(Dp)))))

    out = pl.pallas_call(
        kernel,
        out_shape=jax.ShapeDtypeStruct((B * N, Dp), text_embeddings.dtype),
        grid_spec=pltpu.PrefetchScalarGridSpec(
            num_scalar_prefetch=0,
            grid=grid,
            in_specs=[
                pl.BlockSpec((tb * N, Dp), lambda i: (i, 0)),   # text rows (queries)
                pl.BlockSpec((tb * M, Dp), lambda i: (i, 0)),   # neighbour rows (k/v)
                pl.BlockSpec((Dp, Dp), const),                  # Wq (scaled)
                pl.BlockSpec((1, Dp), const),                   # bq (scaled)
                pl.BlockSpec((Dp, 2 * Dp), const),              # [Wk | Wv]
                pl.BlockSpec((1, 2 * Dp), const),               # [bk | bv]
                pl.BlockSpec((tb * N, 1), const),               # row batch ids
                pl.BlockSpec((1, tb * M), const),               # col batch ids
            ],
            out_specs=pl.BlockSpec((tb * N, Dp), lambda i: (i, 0)),
        ),
        compiler_params=pltpu.CompilerParams(
            dimension_semantics=("parallel",),
            vmem_limit_bytes=vmem_limit,
        ),
    )(txt, nb, wq, bq, wkv, bkv, row_ids, col_ids)

    return out.reshape(B, N, Dp)[:, :, :D]


def _init_params(key, d, init_range=0.02):
    # deterministic synthetic init mirroring _init_weights2:
    # Linear weight ~ N(0, init_range), bias = 0
    ks = jax.random.split(key, 3)
    return {
        "query_map_w": init_range * jax.random.normal(ks[0], (d, d), jnp.float32),
        "query_map_b": jnp.zeros((d,), jnp.float32),
        "key_map_w":   init_range * jax.random.normal(ks[1], (d, d), jnp.float32),
        "key_map_b":   jnp.zeros((d,), jnp.float32),
        "value_map_w": init_range * jax.random.normal(ks[2], (d, d), jnp.float32),
        "value_map_b": jnp.zeros((d,), jnp.float32),
    }


def _reference(text, nb, params):
    # pure-JAX f32 reference
    q = text @ params["query_map_w"].T + params["query_map_b"]
    k = nb @ params["key_map_w"].T + params["key_map_b"]
    v = nb @ params["value_map_w"].T + params["value_map_b"]
    s = jnp.einsum("bnd,bmd->bnm", q, k) / math.sqrt(text.shape[-1])
    p = jax.nn.softmax(s, axis=-1)
    return jnp.tanh(jnp.einsum("bnm,bmd->bnd", p, v))


if __name__ == "__main__":
    B, N, M, D = 2, 8, 8, 32   # batch, sents, neighbour sents, plm_hidden_dim
    key = jax.random.PRNGKey(0)
    k_txt, k_nb, k_par = jax.random.split(key, 3)

    text_embeddings = jax.random.normal(k_txt, (B, N, D), jnp.float32)
    nb_text_embeddings = jax.random.normal(k_nb, (B, M, D), jnp.float32)
    params = _init_params(k_par, D)

    out = event_reasoning_forward(text_embeddings, nb_text_embeddings, params)
    out = jax.block_until_ready(out)

    ref = _reference(text_embeddings, nb_text_embeddings, params)
    assert out.shape == (B, N, D)
    # bf16 matmul operands + approx reciprocal -> loosened tolerance vs. f32 ref
    assert jnp.allclose(out, ref, atol=2e-2, rtol=2e-2), \
        float(jnp.max(jnp.abs(out - ref)))
    print("KERNEL_OK")
</pallas_src>

<mosaic_0001>
module attributes {stable_mosaic.version = 11 : i64} {
  func.func @_erm_attn_kernel(%arg0: i32, %arg1: memref<16x128xbf16, #tpu.memory_space<vmem>>, %arg2: memref<16x128xbf16, #tpu.memory_space<vmem>>, %arg3: memref<128x128xbf16, #tpu.memory_space<vmem>>, %arg4: memref<1x128xf32, #tpu.memory_space<vmem>>, %arg5: memref<128x256xbf16, #tpu.memory_space<vmem>>, %arg6: memref<1x256xf32, #tpu.memory_space<vmem>>, %arg7: memref<16x1xi32, #tpu.memory_space<vmem>>, %arg8: memref<1x16xi32, #tpu.memory_space<vmem>>, %arg9: memref<16x128xf32, #tpu.memory_space<vmem>>) attributes {dimension_semantics = [#tpu.dimension_semantics<parallel>], iteration_bounds = array<i64: 1>, scalar_prefetch = 0 : i64, scratch_operands = 0 : i64, tpu.core_type = #tpu.core_type<tc>, window_params = [{transform_indices = @transform_0, window_bounds = array<i64: 16, 128>}, {transform_indices = @transform_1, window_bounds = array<i64: 16, 128>}, {pipeline_mode = #tpu.pipeline_mode<synchronous>, transform_indices = @transform_2, window_bounds = array<i64: 128, 128>}, {pipeline_mode = #tpu.pipeline_mode<synchronous>, transform_indices = @transform_3, window_bounds = array<i64: 1, 128>}, {pipeline_mode = #tpu.pipeline_mode<synchronous>, transform_indices = @transform_4, window_bounds = array<i64: 128, 256>}, {pipeline_mode = #tpu.pipeline_mode<synchronous>, transform_indices = @transform_5, window_bounds = array<i64: 1, 256>}, {pipeline_mode = #tpu.pipeline_mode<synchronous>, transform_indices = @transform_6, window_bounds = array<i64: 16, 1>}, {pipeline_mode = #tpu.pipeline_mode<synchronous>, transform_indices = @transform_7, window_bounds = array<i64: 1, 16>}, {transform_indices = @transform_8, window_bounds = array<i64: 16, 128>}]} {
    %c0 = arith.constant 0 : index
    %c0_0 = arith.constant 0 : index
    %0 = vector.load %arg1[%c0, %c0_0] : memref<16x128xbf16, #tpu.memory_space<vmem>>, vector<16x128xbf16>
    %c0_1 = arith.constant 0 : index
    %c0_2 = arith.constant 0 : index
    %1 = vector.load %arg2[%c0_1, %c0_2] : memref<16x128xbf16, #tpu.memory_space<vmem>>, vector<16x128xbf16>
    %c0_3 = arith.constant 0 : index
    %c0_4 = arith.constant 0 : index
    %2 = vector.load %arg3[%c0_3, %c0_4] : memref<128x128xbf16, #tpu.memory_space<vmem>>, vector<128x128xbf16>
    %cst = arith.constant dense<0.000000e+00> : vector<16x128xf32>
    %3 = tpu.matmul %0, %2, %cst {dimension_numbers = #tpu.dot_dimension_numbers<[1], [0], [0], [1], [0, 0, 1, 1], [], []>} : vector<16x128xbf16>, vector<128x128xbf16>, vector<16x128xf32> -> vector<16x128xf32>
    %c0_5 = arith.constant 0 : index
    %c0_6 = arith.constant 0 : index
    %4 = vector.load %arg4[%c0_5, %c0_6] : memref<1x128xf32, #tpu.memory_space<vmem>>, vector<1x128xf32>
    %5 = vector.broadcast %4 : vector<1x128xf32> to vector<16x128xf32>
    %6 = arith.addf %3, %5 : vector<16x128xf32>
    %c0_7 = arith.constant 0 : index
    %c0_8 = arith.constant 0 : index
    %7 = vector.load %arg5[%c0_7, %c0_8] : memref<128x256xbf16, #tpu.memory_space<vmem>>, vector<128x256xbf16>
    %cst_9 = arith.constant dense<0.000000e+00> : vector<16x256xf32>
    %8 = tpu.matmul %1, %7, %cst_9 {dimension_numbers = #tpu.dot_dimension_numbers<[1], [0], [0], [1], [0, 0, 1, 1], [], []>} : vector<16x128xbf16>, vector<128x256xbf16>, vector<16x256xf32> -> vector<16x256xf32>
    %c0_10 = arith.constant 0 : index
    %c0_11 = arith.constant 0 : index
    %9 = vector.load %arg6[%c0_10, %c0_11] : memref<1x256xf32, #tpu.memory_space<vmem>>, vector<1x256xf32>
    %10 = vector.broadcast %9 : vector<1x256xf32> to vector<16x256xf32>
    %11 = arith.addf %8, %10 : vector<16x256xf32>
    %12 = arith.truncf %6 : vector<16x128xf32> to vector<16x128xbf16>
    %13 = arith.truncf %11 : vector<16x256xf32> to vector<16x256xbf16>
    %14 = vector.extract_strided_slice %13 {offsets = [0, 0], sizes = [16, 128], strides = [1, 1]} : vector<16x256xbf16> to vector<16x128xbf16>
    %15 = vector.extract_strided_slice %13 {offsets = [0, 128], sizes = [16, 128], strides = [1, 1]} : vector<16x256xbf16> to vector<16x128xbf16>
    %cst_12 = arith.constant dense<0.000000e+00> : vector<16x16xf32>
    %16 = tpu.matmul %12, %14, %cst_12 {dimension_numbers = #tpu.dot_dimension_numbers<[1], [1], [0], [0], [0, 0, 1, 0], [], []>} : vector<16x128xbf16>, vector<16x128xbf16>, vector<16x16xf32> -> vector<16x16xf32>
    %c0_13 = arith.constant 0 : index
    %c0_14 = arith.constant 0 : index
    %17 = vector.load %arg7[%c0_13, %c0_14] : memref<16x1xi32, #tpu.memory_space<vmem>>, vector<16x1xi32>
    %c0_15 = arith.constant 0 : index
    %c0_16 = arith.constant 0 : index
    %18 = vector.load %arg8[%c0_15, %c0_16] : memref<1x16xi32, #tpu.memory_space<vmem>>, vector<1x16xi32>
    %19 = vector.broadcast %17 : vector<16x1xi32> to vector<16x16xi32>
    %20 = vector.broadcast %18 : vector<1x16xi32> to vector<16x16xi32>
    %21 = arith.cmpi eq, %19, %20 : vector<16x16xi32>
    %cst_17 = arith.constant -1.000000e+30 : f32
    %22 = vector.broadcast %cst_17 : f32 to vector<16x16xf32>
    %23 = arith.select %21, %16, %22 : vector<16x16xi1>, vector<16x16xf32>
    %cst_18 = arith.constant dense<0xFF800000> : vector<16xf32>
    %24 = vector.multi_reduction <maximumf>, %23, %cst_18 [1] : vector<16x16xf32> to vector<16xf32>
    %25 = vector.shape_cast %24 : vector<16xf32> to vector<16x1xf32>
    %26 = vector.broadcast %25 : vector<16x1xf32> to vector<16x16xf32>
    %27 = arith.subf %23, %26 : vector<16x16xf32>
    %28 = math.exp %27 : vector<16x16xf32>
    %cst_19 = arith.constant dense<0.000000e+00> : vector<16xf32>
    %29 = vector.multi_reduction <add>, %28, %cst_19 [1] : vector<16x16xf32> to vector<16xf32>
    %30 = vector.shape_cast %29 : vector<16xf32> to vector<16x1xf32>
    %31 = tpu.reciprocal %30 {approx = true} : vector<16x1xf32> -> vector<16x1xf32>
    %32 = vector.broadcast %31 : vector<16x1xf32> to vector<16x16xf32>
    %33 = arith.mulf %28, %32 : vector<16x16xf32>
    %34 = arith.truncf %33 : vector<16x16xf32> to vector<16x16xbf16>
    %cst_20 = arith.constant dense<0.000000e+00> : vector<16x128xf32>
    %35 = tpu.matmul %34, %15, %cst_20 {dimension_numbers = #tpu.dot_dimension_numbers<[1], [0], [0], [1], [0, 0, 1, 1], [], []>} : vector<16x16xbf16>, vector<16x128xbf16>, vector<16x128xf32> -> vector<16x128xf32>
    %36 = math.tanh %35 : vector<16x128xf32>
    %c0_21 = arith.constant 0 : index
    %c0_22 = arith.constant 0 : index
    %37 = vector.load %arg9[%c0_21, %c0_22] : memref<16x128xf32, #tpu.memory_space<vmem>>, vector<16x128xf32>
    tpu.vector_store %arg9[%c0_21, %c0_22], %36 {strides = array<i32>} : memref<16x128xf32, #tpu.memory_space<vmem>>, vector<16x128xf32>,
    return
  }
  func.func @transform_0(%arg0: i32) -> (i32, i32) {
    %c0_i32 = arith.constant 0 : i32
    %c0_i32_0 = arith.constant 0 : i32
    return %arg0, %c0_i32 : i32, i32
  }
  func.func @transform_1(%arg0: i32) -> (i32, i32) {
    %c0_i32 = arith.constant 0 : i32
    %c0_i32_0 = arith.constant 0 : i32
    return %arg0, %c0_i32 : i32, i32
  }
  func.func @transform_2(%arg0: i32) -> (i32, i32) {
    %c0_i32 = arith.constant 0 : i32
    %c0_i32_0 = arith.constant 0 : i32
    %c0_i32_1 = arith.constant 0 : i32
    return %c0_i32, %c0_i32_0 : i32, i32
  }
  func.func @transform_3(%arg0: i32) -> (i32, i32) {
    %c0_i32 = arith.constant 0 : i32
    %c0_i32_0 = arith.constant 0 : i32
    %c0_i32_1 = arith.constant 0 : i32
    return %c0_i32, %c0_i32_0 : i32, i32
  }
  func.func @transform_4(%arg0: i32) -> (i32, i32) {
    %c0_i32 = arith.constant 0 : i32
    %c0_i32_0 = arith.constant 0 : i32
    %c0_i32_1 = arith.constant 0 : i32
    return %c0_i32, %c0_i32_0 : i32, i32
  }
  func.func @transform_5(%arg0: i32) -> (i32, i32) {
    %c0_i32 = arith.constant 0 : i32
    %c0_i32_0 = arith.constant 0 : i32
    %c0_i32_1 = arith.constant 0 : i32
    return %c0_i32, %c0_i32_0 : i32, i32
  }
  func.func @transform_6(%arg0: i32) -> (i32, i32) {
    %c0_i32 = arith.constant 0 : i32
    %c0_i32_0 = arith.constant 0 : i32
    %c0_i32_1 = arith.constant 0 : i32
    return %c0_i32, %c0_i32_0 : i32, i32
  }
  func.func @transform_7(%arg0: i32) -> (i32, i32) {
    %c0_i32 = arith.constant 0 : i32
    %c0_i32_0 = arith.constant 0 : i32
    %c0_i32_1 = arith.constant 0 : i32
    return %c0_i32, %c0_i32_0 : i32, i32
  }
  func.func @transform_8(%arg0: i32) -> (i32, i32) {
    %c0_i32 = arith.constant 0 : i32
    %c0_i32_0 = arith.constant 0 : i32
    return %arg0, %c0_i32 : i32, i32
  }
}

</mosaic_0001>

<bundles_post_ra>
// kernel: tpu_custom_call.1
= control target key start
LH: loop header
LB: loop body
LE: loop exit
PB: predicated region body
PF: predicated region fallthrough
CT: control target
= control target key end

     0   :  { %13 = vsyncpa [#allocation3], 0  ;;  %s723_s0 = inlined_call_operand.vmem [shape: bf16[16,128], index: 0, kind: input, shape index: {}]   ;;  %s724_s1 = inlined_call_operand.vmem [shape: bf16[16,128], index: 1, kind: input, shape index: {}]   ;;  %s725_s2 = inlined_call_operand.hbm [shape: bf16[128,128], index: 2, kind: input, shape index: {}]   ;;  %s726_s3 = inlined_call_operand.vmem [shape: f32[1,128], index: 3, kind: input, shape index: {}]   ;;  %s727_s4 = inlined_call_operand.hbm [shape: bf16[128,256], index: 4, kind: input, shape index: {}]   ;;  %s728_s5 = inlined_call_operand.vmem [shape: f32[1,256], index: 5, kind: input, shape index: {}]   ;;  %s729_s6 = inlined_call_operand.vmem [shape: s32[16,1], index: 6, kind: input, shape index: {}]   ;;  %s730_s7 = inlined_call_operand.vmem [shape: s32[1,16], index: 7, kind: input, shape index: {}]   ;;  %s731_s8 = inlined_call_operand.hbm [shape: f32[16,128], index: 8, kind: output, shape index: {}]  }
   0x1   :  { %14 = vsyncpa [#allocation6], 0 }
   0x2   :  { %15 = vsyncpa [#allocation4], 0  ;;  %s24_s29 = sshll.u32 %s725_s2, 4  ;;  %s629_s30 = smov [#allocation2]   ;;  %s25_s29 = int_to_ptr.hbm [resolvable:$true] %s24_s29 }
   0x3   :  { %s26_s9 = sshll.u32 %s629_s30, 4  ;;  %s39_s12 = sshll.u32 %s727_s4, 4  ;;  %s27_s9 = int_to_ptr.vmem [resolvable:$true] %s26_s9  ;;  %s40_s12 = int_to_ptr.hbm [resolvable:$true] %s39_s12 }
   0x4   :  { %s630_s13 = smov 64   ;;  %s631_s14 = smov 4  }
   0x5   :  { %32 = dma.hbm_to_vmem [thread:$0]  %s25_s29, 1024, %s27_s9, [#allocation3], %s630_s13, %s630_s13, %s631_s14  }
   0x6   :  { %s632_s15 = smov [#allocation5]   ;;  %s633_s17 = smov 128  }
   0x7   :  { %s41_s16 = sshll.u32 %s632_s15, 4  ;;  %s634_s18 = smov 8   ;;  %s42_s16 = int_to_ptr.vmem [resolvable:$true] %s41_s16 }
   0x8   :  { %47 = dma.hbm_to_vmem [thread:$0]  %s40_s12, 2048, %s42_s16, [#allocation6], %s633_s17, %s633_s17, %s634_s18  }
   0x9   :  { %623 = dma.done.wait [#allocation3], 1024  }
   0xa   :  { %624 = vsyncadd [#allocation3], 4294966272 }
   0xb   :  { %625 = dma.done.wait [#allocation6], 2048  }
   0xc   :  { %626 = vsyncadd [#allocation6], 4294965248  ;;  %v495_v0 = vld [vmem:[#allocation5 + $0x70] sm:$0xf]  ;;  %v527_v1 = vld [vmem:[#allocation5 + $0x74] sm:$0xf0] }
   0xd   :  { %v526_v2 = vld [vmem:[#allocation5 + $0x74] sm:$0xf]  ;;  %v496_v3 = vor.u32 %v527_v1, %v495_v0  ;;  %v497_v4 = vld [vmem:[#allocation5 + $0x78] sm:$0xf0]  ;;  %v487_v5 = vld [vmem:[#allocation5 + $0x60] sm:$0xf] }
   0xe   :  { %v525_v6 = vld [vmem:[#allocation5 + $0x64] sm:$0xf0]  ;;  %v500_v7 = vor.u32 %v526_v2, %v497_v4  ;;  %v524_v8 = vld [vmem:[#allocation5 + $0x64] sm:$0xf]  ;;  %v489_v9 = vld [vmem:[#allocation5 + $0x68] sm:$0xf0] }
   0xf   :  { %263 = vmatpush.bf16.msra.mxu1 %v496_v3  ;;  %v488_v10 = vor.u32 %v525_v6, %v487_v5  ;;  %v492_v11 = vor.u32 %v524_v8, %v489_v9  ;;  %v479_v12 = vld [vmem:[#allocation5 + $0x50] sm:$0xf]  ;;  %v523_v13 = vld [vmem:[#allocation5 + $0x54] sm:$0xf0]  ;;  %v522_v15 = vld [vmem:[#allocation5 + $0x54] sm:$0xf] }
  0x10   :  { %277 = vmatpush.bf16.msra.mxu2 %v500_v7  ;;  %v511_v14 = vld [vmem:[#allocation2 + $0x38] sm:$0xff]  ;;  %v510_v17 = vld [vmem:[#allocation2 + $0x30] sm:$0xff]  ;;  %v480_v18 = vor.u32 %v523_v13, %v479_v12  ;;  %v471_v20 = vld [vmem:[#allocation5 + $0x40] sm:$0xf]  ;;  %v635_v59 = vmov 0   ;;  %vm328_vm1 = vcmask 130048  }
  0x11   :  { %v481_v16 = vld [vmem:[#allocation5 + $0x58] sm:$0xf0]  ;;  %141 = vmatpush.bf16.msra.mxu0 %v511_v14  ;;  %v521_v21 = vld [vmem:[#allocation5 + $0x44] sm:$0xf0]  ;;  %v520_v22 = vld [vmem:[#allocation5 + $0x44] sm:$0xf]  ;;  %536 = vset.pattern.permute.xlu0 %v635_v59 }
  0x12   :  { %v484_v19 = vor.u32 %v522_v15, %v481_v16  ;;  %v473_v23 = vld [vmem:[#allocation5 + $0x48] sm:$0xf0]  ;;  %v472_v25 = vor.u32 %v521_v21, %v471_v20  ;;  %v463_v27 = vld [vmem:[#allocation5 + $0x30] sm:$0xf]  ;;  %v519_v28 = vld [vmem:[#allocation5 + $0x34] sm:$0xf0] }
  0x13   :  { %264 = vmatpush.bf16.msra.mxu1 %v488_v10  ;;  %v509_v24 = vld [vmem:[#allocation2 + $0x28] sm:$0xff]  ;;  %v476_v26 = vor.u32 %v520_v22, %v473_v23  ;;  %v518_v29 = vld [vmem:[#allocation5 + $0x34] sm:$0xf]  ;;  %v465_v30 = vld [vmem:[#allocation5 + $0x38] sm:$0xf0]  ;;  %v464_v32 = vor.u32 %v519_v28, %v463_v27  ;;  %s383_s29 = sshll.u32 %s731_s8, 4  ;;  %s384_s29 = int_to_ptr.hbm [resolvable:$true] %s383_s29 }
  0x14   :  { %278 = vmatpush.bf16.msra.mxu2 %v492_v11  ;;  %v508_v31 = vld [vmem:[#allocation2 + $0x20] sm:$0xff]  ;;  %v468_v33 = vor.u32 %v518_v29, %v465_v30  ;;  %v517_v35 = vld [vmem:[#allocation5 + $0x24] sm:$0xf0]  ;;  %v457_v37 = vld [vmem:[#allocation5 + $0x28] sm:$0xf0] }
  0x15   :  { %142 = vmatpush.bf16.msra.mxu0 %v510_v17  ;;  %v455_v34 = vld [vmem:[#allocation5 + $0x20] sm:$0xf]  ;;  %v516_v36 = vld [vmem:[#allocation5 + $0x24] sm:$0xf]  ;;  %v507_v38 = vld [vmem:[#allocation2 + $0x18] sm:$0xff] }
  0x16   :  { %v456_v39 = vor.u32 %v517_v35, %v455_v34  ;;  %v460_v40 = vor.u32 %v516_v36, %v457_v37  ;;  %v447_v41 = vld [vmem:[#allocation5 + $0x10] sm:$0xf]  ;;  %v515_v42 = vld [vmem:[#allocation5 + $0x14] sm:$0xf0]  ;;  %v514_v43 = vld [vmem:[#allocation5 + $0x14] sm:$0xf] }
  0x17   :  { %265 = vmatpush.bf16.msra.mxu1 %v480_v18  ;;  %v449_v44 = vld [vmem:[#allocation5 + $0x18] sm:$0xf0]  ;;  %v506_v45 = vld [vmem:[#allocation2 + $0x10] sm:$0xff]  ;;  %v448_v46 = vor.u32 %v515_v42, %v447_v41  ;;  %v439_v48 = vld [vmem:[#allocation5] sm:$0xf] }
  0x18   :  { %279 = vmatpush.bf16.msra.mxu2 %v484_v19  ;;  %v452_v47 = vor.u32 %v514_v43, %v449_v44  ;;  %v513_v49 = vld [vmem:[#allocation5 + $0x4] sm:$0xf0]  ;;  %v512_v50 = vld [vmem:[#allocation5 + $0x4] sm:$0xf]  ;;  %v441_v51 = vld [vmem:[#allocation5 + $0x8] sm:$0xf0] }
  0x19   :  { %143 = vmatpush.bf16.msra.mxu0 %v509_v24  ;;  %v505_v52 = vld [vmem:[#allocation2 + $0x8] sm:$0xff]  ;;  %v440_v53 = vor.u32 %v513_v49, %v439_v48  ;;  %v444_v54 = vor.u32 %v512_v50, %v441_v51  ;;  %v503_v55 = vld [vmem:[%s724_s1] sm:$0xff] }
  0x1a   :  { %v504_v56 = vld [vmem:[#allocation2] sm:$0xff]  ;;  %v315_v62 = vld [vmem:[%s729_s6 + $0x8] sm:$0xff] }
  0x1b   :  { %266 = vmatpush.bf16.msra.mxu1 %v472_v25  ;;  %v502_v57 = vld [vmem:[%s723_s0] sm:$0xff] }
  0x1c   :  { %280 = vmatpush.bf16.msra.mxu2 %v476_v26  ;;  %v314_v58 = vld [vmem:[%s729_s6] sm:$0xff] }
  0x1d   :  { %144 = vmatpush.bf16.msra.mxu0 %v508_v31  ;;  %318 = vperm.xlu0 %536, %v314_v58   ;;  %v171_v61 = vld [vmem:[%s728_s5] sm:$0x3] }
  0x1e   :  { %v173_v0 = vperm.slane %v171_v61, 0  ;;  %v174_v1 = vperm.slane %v171_v61, 1  ;;  %v537_v15 = vld [vmem:[%s726_s3] ss:$0 sm:$0xff]  ;;  %s636_s3 = smov [#allocation7]  }
  0x1f   :  { %267 = vmatpush.bf16.msra.mxu1 %v464_v32  ;;  %v538_v22 = vld [vmem:[%s730_s7] ss:$0 sm:$0xff]  ;;  %s381_s7 = sshll.u32 %s636_s3, 4  ;;  %s382_s7 = int_to_ptr.vmem [resolvable:$true] %s381_s7 }
  0x20   :  { %281 = vmatpush.bf16.msra.mxu2 %v468_v33 }
  0x21   :  { %145 = vmatpush.bf16.msra.mxu0 %v507_v38 }
  0x23   :  { %268 = vmatpush.bf16.msra.mxu1 %v456_v39 }
  0x24   :  { %282 = vmatpush.bf16.msra.mxu2 %v460_v40 }
  0x25   :  { %146 = vmatpush.bf16.msra.mxu0 %v506_v45  ;;  %321 = vperm.xlu0 %536, %v315_v62  }
  0x27   :  { %269 = vmatpush.bf16.msra.mxu1 %v448_v46 }
  0x28   :  { %283 = vmatpush.bf16.msra.mxu2 %v452_v47 }
  0x29   :  { %147 = vmatpush.bf16.msra.mxu0 %v505_v52 }
  0x2b   :  { %270 = vmatpush.bf16.msra.mxu1 %v440_v53 }
  0x2c   :  { %284 = vmatpush.bf16.msra.mxu2 %v444_v54 }
  0x2d   :  { %148 = vmatpush.bf16.msra.mxu0 %v504_v56 }
  0x2e   :  { %271 = vmatmul.bf16.vlgmr.msra.gmra.mxu1 %v503_v55 }
  0x2f   :  { %285 = vmatmul.bf16.vlgmr.msra.gmra.mxu2 %v503_v55 }
  0x30   :  { %149 = vmatmul.bf16.vlgmr.msra.gmra.mxu0 %v502_v57 }
  0x8f   :  { %v319_v23 = vpop.permute.xlu0 %318 }
  0x90   :  { %vm324_vm0 = vcmp.eq.s32.totalorder %v319_v23, %v538_v22 }
  0x97   :  { %v322_v27 = vpop.permute.xlu0 %321 }
  0x98   :  { %vm325_vm2 = vcmp.eq.s32.totalorder %v322_v27, %v538_v22 }
  0xab   :  { %v272_v60 = vpop.f32.mrf.mxu1 }
  0xac   :  { %v273_v2 = vadd.f32 %v272_v60, %v173_v0 }
  0xad   :  { %v150_v4 = vpop.f32.mrf.mxu0 }
  0xae   :  { %v151_v19 = vadd.f32 %v537_v15, %v150_v4 }
  0xb2   :  { %v286_v63 = vpop.f32.mrf.mxu2 }
  0xb3   :  { %v287_v3 = vadd.f32 %v286_v63, %v174_v1  ;;  %v274_v5 = vpop.f32.mrf.mxu1 }
  0xb4   :  { %v275_v8 = vadd.f32 %v274_v5, %v173_v0 }
  0xb5   :  { %v292_v7 = vpack.c.bf16 %v287_v3, %v273_v2  ;;  %v152_v16 = vpop.f32.mrf.mxu0 }
  0xb6   :  { %v153_v20 = vadd.f32 %v537_v15, %v152_v16 }
  0xb7   :  { %v296_v11 = vunpack.c.l.b16 %v292_v7  ;;  %v352_v13 = vunpack.c.h.b16 %v292_v7 }
  0xb8   :  { %v291_v21 = vpack.c.bf16 %v153_v20, %v151_v19 }
  0xba   :  { %v288_v6 = vpop.f32.mrf.mxu2 }
  0xbb   :  { %v289_v9 = vadd.f32 %v288_v6, %v174_v1 }
  0xbd   :  { %v293_v10 = vpack.c.bf16 %v289_v9, %v275_v8 }
  0xbf   :  { %v297_v12 = vunpack.c.l.b16 %v293_v10  ;;  %v353_v14 = vunpack.c.h.b16 %v293_v10 }
  0xc1   :  { %v298_v17 = vpack.c.b16 %v297_v12, %v296_v11  ;;  %v354_v18 = vpack.c.b16 %v353_v14, %v352_v13 }
  0xc3   :  { %307 = vmatpush.bf16.xpose.msra.mxu3 %v298_v17 }
  0xca   :  { %308 = vmatmul.bf16.vlgmr.msra.gmra.mxu3 %v291_v21 }
  0xcb   :  { %366 = vmatpush.bf16.msrb.mxu3 %v354_v18 }
 0x14d   :  { %v309_v24 = vpop.f32.mrf.mxu3 }
 0x14e   :  { %v326_v25 = vsel %vm324_vm0, %v309_v24, -1e+30 }
 0x14f   :  { %v329_v26 = vsel %vm328_vm1, %v326_v25, -inf }
 0x150   :  { %330 = vmax.xlane.f32.xlu1 %v329_v26 }
 0x155   :  { %v311_v28 = vpop.f32.mrf.mxu3 }
 0x156   :  { %v327_v29 = vsel %vm325_vm2, %v311_v28, -1e+30 }
 0x157   :  { %v332_v30 = vsel %vm328_vm1, %v327_v29, -inf }
 0x158   :  { %333 = vmax.xlane.f32.xlu1 %v332_v30 }
 0x1c3   :  { %v331_v31 = vpop.xlane.xlu1 %330 }
 0x1c4   :  { %v335_v32 = vsub.f32 %v326_v25, %v331_v31 }
 0x1c6   :  { %v337_v33 = vmul.f32 1.442695, %v335_v32 }
 0x1c8   :  { %539 = vpow2.f32 %v337_v33 }
 0x1cb   :  { %v334_v34 = vpop.xlane.xlu1 %333 }
 0x1cc   :  { %v336_v35 = vsub.f32 %v327_v29, %v334_v34 }
 0x1ce   :  { %v540_v36 = vpop.eup %539  ;;  %v339_v37 = vmul.f32 1.442695, %v336_v35 }
 0x1cf   :  { %v341_v38 = vsel %vm328_vm1, %v540_v36, 0.0 }
 0x1d0   :  { %541 = vpow2.f32 %v339_v37  ;;  %342 = vadd.xlane.f32.xlu2 %v341_v38 }
 0x1d6   :  { %v542_v39 = vpop.eup %541 }
 0x1d7   :  { %v344_v40 = vsel %vm328_vm1, %v542_v39, 0.0 }
 0x1d8   :  { %345 = vadd.xlane.f32.xlu2 %v344_v40 }
 0x243   :  { %v343_v41 = vpop.xlane.xlu2 %342 }
 0x244   :  { %543 = vrcp.f32 %v343_v41 }
 0x24a   :  { %v544_v43 = vpop.eup %543 }
 0x24b   :  { %v346_v42 = vpop.xlane.xlu2 %345  ;;  %v349_v45 = vmul.f32 %v544_v43, %v540_v36 }
 0x24c   :  { %545 = vrcp.f32 %v346_v42 }
 0x252   :  { %v546_v44 = vpop.eup %545 }
 0x253   :  { %v350_v46 = vmul.f32 %v546_v44, %v542_v39 }
 0x255   :  { %v351_v47 = vpack.c.bf16 %v350_v46, %v349_v45 }
 0x257   :  { %501 = vmatmul.msk.bf16.vlgmr.msrb.gmra.mxu3 %vm328_vm1, %v351_v47 }
 0x2da   :  { %v368_v48 = vpop.f32.mrf.mxu3 }
 0x2db   :  { %547 = vtanh.f32 %v368_v48 }
 0x2e1   :  { %v548_v49 = vpop.eup %547 }
 0x2e2   :  { %375 = vst [vmem:[#allocation7] sm:$0xff] %v548_v49  ;;  %v370_v50 = vpop.f32.mrf.mxu3 }
 0x2e3   :  { %549 = vtanh.f32 %v370_v50 }
 0x2e9   :  { %v550_v51 = vpop.eup %549 }
 0x2ea   :  { %376 = vst [vmem:[#allocation7 + $0x8] sm:$0xff] %v550_v51 }
 0x2eb   :  { %389 = dma.vmem_to_hbm [thread:$0]  %s382_s7, 256, %s384_s29, [#allocation4], %s633_s17, %s633_s17, %s634_s18  }
 0x2ec   :  { %627 = dma.done.wait [#allocation4], 256  }
 0x2ed   :  { %628 = vsyncadd [#allocation4], 4294967040 }
 0x2ee   :  { %394 = vsyncpa [#allocation3], 1 }
 0x2ef   :  { %395 = vsyncpa [#allocation6], 1 }
 0x2f0   :  { %396 = vsyncpa [#allocation4], 1 }

</bundles_post_ra>
